<compile_context>
chip_gen: v5e
topology: v5e:2x2
jax: 0.10.0
libtpu: 0.0.40
codegen_flags: <defaults>
</compile_context>

<pallas_src>
import math

import numpy as np
import jax
import jax.numpy as jnp
from jax.experimental import pallas as pl
from jax.experimental.pallas import tpu as pltpu

# ----- model hyper-params (small, consistent with the module) -----
B = 2           # batch
NQ = 8          # query length
NK = 8          # key/value length
D_MODEL = 32
H = 4           # heads
D_K = 8
D_V = 8
HDK = H * D_K   # 32
HDV = H * D_V   # 32
BN = B * NK     # 16  (rows of the projected k/v)
BHN = B * H * NK  # 64 (head-expanded rows / score columns)
LN_EPS = 1e-5
SCALE = 1.0 / math.sqrt(D_K)   # folded into fc_q at pack time
NEG = -1e30                    # additive mask value (host-side only)

# ----- packed parameter slab layout (all row offsets multiples of 8) -----
R_WQ, R_WK, R_WV, R_WO = 0, 32, 64, 96   # each (32, 32)
R_MASK = 128                             # (64, 32) head-expansion 0/1 mask
R_BIAS = 192                             # (16, 64) additive batch bias 0 / -1e30
R_VEC = 208                              # 8 rows: bq, bk, bv, bo, gamma, beta, pad, pad
SLAB_ROWS = 216
SLAB_LANES = 64


def mha_kernel(q_ref, k_ref, v_ref, p_ref, o_ref):
    """Whole forward pass (both batch elements, all heads) in one invocation."""
    queries = q_ref[...]                                          # (16, 32) f32 residual input

    # ---- parameter views: static slices of the single packed slab ----
    wq_t = p_ref[R_WQ:R_WQ + D_MODEL, 0:HDK].astype(jnp.bfloat16)  # 1/sqrt(d_k) pre-folded
    wk_t = p_ref[R_WK:R_WK + D_MODEL, 0:HDK].astype(jnp.bfloat16)
    wv_t = p_ref[R_WV:R_WV + D_MODEL, 0:HDV].astype(jnp.bfloat16)
    wo_t = p_ref[R_WO:R_WO + HDV, 0:D_MODEL].astype(jnp.bfloat16)
    hv_mask = p_ref[R_MASK:R_MASK + BHN, 0:HDV]                    # (64, 32) 0/1
    batch_bias = p_ref[R_BIAS:R_BIAS + B * NQ, 0:BHN]              # (16, 64) 0 / -1e30
    vec = p_ref[R_VEC:R_VEC + 8, 0:D_MODEL]                        # (8, 32)
    bq, bk, bv = vec[0:1, :], vec[1:2, :], vec[2:3, :]
    bo, gamma, beta = vec[3:4, :], vec[4:5, :], vec[5:6, :]

    # ---- Q/K/V projections: bf16 MXU operands, f32 accumulation + f32 bias ----
    q = jnp.dot(queries.astype(jnp.bfloat16), wq_t, preferred_element_type=jnp.float32) + bq
    k = jnp.dot(k_ref[...].astype(jnp.bfloat16), wk_t, preferred_element_type=jnp.float32) + bk
    v = jnp.dot(v_ref[...].astype(jnp.bfloat16), wv_t, preferred_element_type=jnp.float32) + bv

    # ---- head-expanded (block-diagonal) K and V: sublane concats + constant mask.
    #      Row r = h*(B*NK) + b*NK + j ; hv_mask zeroes lanes of other heads.  ----
    k_bd = (jnp.concatenate([k] * H, axis=0) * hv_mask).astype(jnp.bfloat16)   # (64, 32)
    v_bd = (jnp.concatenate([v] * H, axis=0) * hv_mask).astype(jnp.bfloat16)   # (64, 32)

    # ---- scores for every (batch, head) pair packed along lanes: (16, 64).
    #      Contract the last dims of both operands (transposed-RHS matmul) so no
    #      k.T XLU transpose / lane replication is needed.  ----
    s = jax.lax.dot_general(q.astype(jnp.bfloat16), k_bd,
                            (((1,), (1,)), ((), ())),
                            preferred_element_type=jnp.float32)
    s = s + batch_bias            # wrong-batch columns -> -1e30 (additive, no select)

    # Shared per-row max across heads is mathematically exact; every row has 32
    # valid (same-batch) columns, so no fully-masked row / NaN is possible here.
    m = jnp.max(s, axis=-1, keepdims=True)
    e = jnp.exp(s - m)            # masked columns -> exactly 0      (f32 VPU/EUP)

    # Numerator and per-head denominator: one MXU op each; heads come out already
    # concatenated head-major along lanes (matches the torch .view(h*d_v) layout).
    eb = e.astype(jnp.bfloat16)
    num = jnp.dot(eb, v_bd, preferred_element_type=jnp.float32)                       # (16, 32)
    den = jnp.dot(eb, hv_mask.astype(jnp.bfloat16), preferred_element_type=jnp.float32)
    concat = num * pl.reciprocal(den, approx=True)   # EUP reciprocal (softmax @ V, all heads)

    # ---- output projection (fc_o), residual add, LayerNorm (all f32 VPU math) ----
    attn = jnp.dot(concat.astype(jnp.bfloat16), wo_t, preferred_element_type=jnp.float32) + bo
    # Dropout(p=0.1) is identity in eval mode.
    y = queries + attn
    mean = jnp.mean(y, axis=-1, keepdims=True)
    var = jnp.mean(jnp.square(y - mean), axis=-1, keepdims=True)
    o_ref[...] = ((y - mean) * jax.lax.rsqrt(var + LN_EPS) * gamma + beta).astype(o_ref.dtype)


def prepare_params(params):
    """One-time host-side packing of ALL per-call constants into a single slab."""
    wq, bq, wk, bk, wv, bv, wo, bo, gamma, beta = (np.asarray(p, np.float32) for p in params)
    slab = np.zeros((SLAB_ROWS, SLAB_LANES), np.float32)
    slab[R_WQ:R_WQ + D_MODEL, 0:HDK] = wq.T * SCALE        # fold 1/sqrt(d_k) into fc_q
    slab[R_WK:R_WK + D_MODEL, 0:HDK] = wk.T
    slab[R_WV:R_WV + D_MODEL, 0:HDV] = wv.T
    slab[R_WO:R_WO + HDV, 0:D_MODEL] = wo.T
    # head-expansion mask: expanded row r = (h, b, j) -> head r // (B*NK);
    # projected feature column c -> head c // D_V.
    r = np.arange(BHN)[:, None]
    c = np.arange(HDV)[None, :]
    slab[R_MASK:R_MASK + BHN, 0:HDV] = (r // BN == c // D_V).astype(np.float32)
    # additive batch bias: query row (b, i) may only attend to score columns
    # (h, b', j) with b' == b.
    rq = np.arange(B * NQ)[:, None]
    cs = np.arange(BHN)[None, :]
    slab[R_BIAS:R_BIAS + B * NQ, 0:BHN] = np.where(rq // NQ == (cs % BN) // NK, 0.0, NEG)
    slab[R_VEC + 0, 0:HDK] = bq * SCALE
    slab[R_VEC + 1, 0:HDK] = bk
    slab[R_VEC + 2, 0:HDV] = bv
    slab[R_VEC + 3, 0:D_MODEL] = bo
    slab[R_VEC + 4, 0:D_MODEL] = gamma
    slab[R_VEC + 5, 0:D_MODEL] = beta
    return jnp.asarray(slab)


@jax.jit
def multi_head_attention(queries, keys, values, packed_params):
    """queries/keys/values: (B, N, D_MODEL); packed_params from prepare_params()."""
    assert queries.shape == (B, NQ, D_MODEL), "unexpected queries shape"
    assert keys.shape == (B, NK, D_MODEL), "unexpected keys shape"
    assert values.shape == (B, NK, D_MODEL), "unexpected values shape"
    assert packed_params.shape == (SLAB_ROWS, SLAB_LANES), "run prepare_params() first"

    vmem = pl.BlockSpec(memory_space=pltpu.MemorySpace.VMEM)
    out2d = pl.pallas_call(
        mha_kernel,
        out_shape=jax.ShapeDtypeStruct((B * NQ, D_MODEL), jnp.float32),
        in_specs=[vmem, vmem, vmem, vmem],
        out_specs=vmem,
    )(queries.reshape(B * NQ, D_MODEL),
      keys.reshape(B * NK, D_MODEL),
      values.reshape(B * NK, D_MODEL),
      packed_params)
    return out2d.reshape(B, NQ, D_MODEL)


def xavier_uniform(key, shape):
    fan_out, fan_in = shape
    limit = math.sqrt(6.0 / (fan_in + fan_out))
    return jax.random.uniform(key, shape, jnp.float32, -limit, limit)


def init_params(key):
    ks = jax.random.split(key, 4)
    wq = xavier_uniform(ks[0], (H * D_K, D_MODEL))
    wk = xavier_uniform(ks[1], (H * D_K, D_MODEL))
    wv = xavier_uniform(ks[2], (H * D_V, D_MODEL))
    wo = xavier_uniform(ks[3], (D_MODEL, H * D_V))
    bq = jnp.zeros((H * D_K,), jnp.float32)
    bk = jnp.zeros((H * D_K,), jnp.float32)
    bv = jnp.zeros((H * D_V,), jnp.float32)
    bo = jnp.zeros((D_MODEL,), jnp.float32)
    gamma = jnp.ones((D_MODEL,), jnp.float32)
    beta = jnp.zeros((D_MODEL,), jnp.float32)
    return (wq, bq, wk, bk, wv, bv, wo, bo, gamma, beta)


def reference(queries, keys, values, params):
    """Pure-JAX f32 re-implementation of the PyTorch module (default config)."""
    (wq, bq, wk, bk, wv, bv, wo, bo, gamma, beta) = params
    q = queries @ wq.T + bq
    k = keys @ wk.T + bk
    v = values @ wv.T + bv
    q = q.reshape(B, NQ, H, D_K).transpose(0, 2, 1, 3)
    k = k.reshape(B, NK, H, D_K).transpose(0, 2, 3, 1)
    v = v.reshape(B, NK, H, D_V).transpose(0, 2, 1, 3)
    att = jnp.matmul(q, k) / math.sqrt(D_K)
    att = jax.nn.softmax(att, axis=-1)
    out = jnp.matmul(att, v).transpose(0, 2, 1, 3).reshape(B, NQ, H * D_V)
    out = out @ wo.T + bo
    x = queries + out
    mean = jnp.mean(x, axis=-1, keepdims=True)
    var = jnp.mean((x - mean) ** 2, axis=-1, keepdims=True)
    return (x - mean) / jnp.sqrt(var + LN_EPS) * gamma + beta


if __name__ == "__main__":
    key = jax.random.PRNGKey(0)
    kq, kk, kv, kp = jax.random.split(key, 4)
    queries = jax.random.normal(kq, (B, NQ, D_MODEL), jnp.float32)
    keys = jax.random.normal(kk, (B, NK, D_MODEL), jnp.float32)
    values = jax.random.normal(kv, (B, NK, D_MODEL), jnp.float32)
    params = init_params(kp)
    packed = prepare_params(params)   # one-time packing, outside the call path

    out = multi_head_attention(queries, keys, values, packed)
    out = jax.block_until_ready(out)

    ref = reference(queries, keys, values, params)
    assert out.shape == (B, NQ, D_MODEL)
    # bf16 MXU operands (per perf review) + approx EUP reciprocal -> relaxed
    # tolerance vs the f32 reference; dropping the bf16 casts restores <1e-3.
    assert jnp.allclose(out, ref, atol=3e-2, rtol=3e-2), "mismatch vs reference"

    print("KERNEL_OK")
</pallas_src>

<mosaic_0001>
module attributes {stable_mosaic.version = 11 : i64} {
  func.func @mha_kernel(%arg0: memref<16x32xf32, #tpu.memory_space<vmem>>, %arg1: memref<16x32xf32, #tpu.memory_space<vmem>>, %arg2: memref<16x32xf32, #tpu.memory_space<vmem>>, %arg3: memref<216x64xf32, #tpu.memory_space<vmem>>, %arg4: memref<16x32xf32, #tpu.memory_space<vmem>>) attributes {dimension_semantics = [], scalar_prefetch = 0 : i64, scratch_operands = 0 : i64, tpu.core_type = #tpu.core_type<tc>} {
    %c0 = arith.constant 0 : index
    %c0_0 = arith.constant 0 : index
    %0 = vector.load %arg0[%c0, %c0_0] : memref<16x32xf32, #tpu.memory_space<vmem>>, vector<16x32xf32>
    %c0_1 = arith.constant 0 : index
    %c0_2 = arith.constant 0 : index
    %1 = vector.load %arg3[%c0_1, %c0_2] : memref<216x64xf32, #tpu.memory_space<vmem>>, vector<32x32xf32>
    %2 = arith.truncf %1 : vector<32x32xf32> to vector<32x32xbf16>
    %c32 = arith.constant 32 : index
    %c0_3 = arith.constant 0 : index
    %3 = vector.load %arg3[%c32, %c0_3] : memref<216x64xf32, #tpu.memory_space<vmem>>, vector<32x32xf32>
    %4 = arith.truncf %3 : vector<32x32xf32> to vector<32x32xbf16>
    %c64 = arith.constant 64 : index
    %c0_4 = arith.constant 0 : index
    %5 = vector.load %arg3[%c64, %c0_4] : memref<216x64xf32, #tpu.memory_space<vmem>>, vector<32x32xf32>
    %6 = arith.truncf %5 : vector<32x32xf32> to vector<32x32xbf16>
    %c96 = arith.constant 96 : index
    %c0_5 = arith.constant 0 : index
    %7 = vector.load %arg3[%c96, %c0_5] : memref<216x64xf32, #tpu.memory_space<vmem>>, vector<32x32xf32>
    %8 = arith.truncf %7 : vector<32x32xf32> to vector<32x32xbf16>
    %c128 = arith.constant 128 : index
    %c0_6 = arith.constant 0 : index
    %9 = vector.load %arg3[%c128, %c0_6] : memref<216x64xf32, #tpu.memory_space<vmem>>, vector<64x32xf32>
    %c192 = arith.constant 192 : index
    %c0_7 = arith.constant 0 : index
    %10 = vector.load %arg3[%c192, %c0_7] : memref<216x64xf32, #tpu.memory_space<vmem>>, vector<16x64xf32>
    %c208 = arith.constant 208 : index
    %c0_8 = arith.constant 0 : index
    %11 = vector.load %arg3[%c208, %c0_8] : memref<216x64xf32, #tpu.memory_space<vmem>>, vector<8x32xf32>
    %12 = vector.extract_strided_slice %11 {offsets = [0, 0], sizes = [1, 32], strides = [1, 1]} : vector<8x32xf32> to vector<1x32xf32>
    %13 = vector.extract_strided_slice %11 {offsets = [1, 0], sizes = [1, 32], strides = [1, 1]} : vector<8x32xf32> to vector<1x32xf32>
    %14 = vector.extract_strided_slice %11 {offsets = [2, 0], sizes = [1, 32], strides = [1, 1]} : vector<8x32xf32> to vector<1x32xf32>
    %15 = vector.extract_strided_slice %11 {offsets = [3, 0], sizes = [1, 32], strides = [1, 1]} : vector<8x32xf32> to vector<1x32xf32>
    %16 = vector.extract_strided_slice %11 {offsets = [4, 0], sizes = [1, 32], strides = [1, 1]} : vector<8x32xf32> to vector<1x32xf32>
    %17 = vector.extract_strided_slice %11 {offsets = [5, 0], sizes = [1, 32], strides = [1, 1]} : vector<8x32xf32> to vector<1x32xf32>
    %18 = arith.truncf %0 : vector<16x32xf32> to vector<16x32xbf16>
    %cst = arith.constant dense<0.000000e+00> : vector<16x32xf32>
    %19 = tpu.matmul %18, %2, %cst {dimension_numbers = #tpu.dot_dimension_numbers<[1], [0], [0], [1], [0, 0, 1, 1], [], []>} : vector<16x32xbf16>, vector<32x32xbf16>, vector<16x32xf32> -> vector<16x32xf32>
    %20 = vector.broadcast %12 : vector<1x32xf32> to vector<16x32xf32>
    %21 = arith.addf %19, %20 : vector<16x32xf32>
    %c0_9 = arith.constant 0 : index
    %c0_10 = arith.constant 0 : index
    %22 = vector.load %arg1[%c0_9, %c0_10] : memref<16x32xf32, #tpu.memory_space<vmem>>, vector<16x32xf32>
    %23 = arith.truncf %22 : vector<16x32xf32> to vector<16x32xbf16>
    %cst_11 = arith.constant dense<0.000000e+00> : vector<16x32xf32>
    %24 = tpu.matmul %23, %4, %cst_11 {dimension_numbers = #tpu.dot_dimension_numbers<[1], [0], [0], [1], [0, 0, 1, 1], [], []>} : vector<16x32xbf16>, vector<32x32xbf16>, vector<16x32xf32> -> vector<16x32xf32>
    %25 = vector.broadcast %13 : vector<1x32xf32> to vector<16x32xf32>
    %26 = arith.addf %24, %25 : vector<16x32xf32>
    %c0_12 = arith.constant 0 : index
    %c0_13 = arith.constant 0 : index
    %27 = vector.load %arg2[%c0_12, %c0_13] : memref<16x32xf32, #tpu.memory_space<vmem>>, vector<16x32xf32>
    %28 = arith.truncf %27 : vector<16x32xf32> to vector<16x32xbf16>
    %cst_14 = arith.constant dense<0.000000e+00> : vector<16x32xf32>
    %29 = tpu.matmul %28, %6, %cst_14 {dimension_numbers = #tpu.dot_dimension_numbers<[1], [0], [0], [1], [0, 0, 1, 1], [], []>} : vector<16x32xbf16>, vector<32x32xbf16>, vector<16x32xf32> -> vector<16x32xf32>
    %30 = vector.broadcast %14 : vector<1x32xf32> to vector<16x32xf32>
    %31 = arith.addf %29, %30 : vector<16x32xf32>
    %32 = tpu.concatenate %26, %26, %26, %26 in 0 : vector<16x32xf32>, vector<16x32xf32>, vector<16x32xf32>, vector<16x32xf32> -> vector<64x32xf32>
    %33 = arith.mulf %32, %9 : vector<64x32xf32>
    %34 = arith.truncf %33 : vector<64x32xf32> to vector<64x32xbf16>
    %35 = tpu.concatenate %31, %31, %31, %31 in 0 : vector<16x32xf32>, vector<16x32xf32>, vector<16x32xf32>, vector<16x32xf32> -> vector<64x32xf32>
    %36 = arith.mulf %35, %9 : vector<64x32xf32>
    %37 = arith.truncf %36 : vector<64x32xf32> to vector<64x32xbf16>
    %38 = arith.truncf %21 : vector<16x32xf32> to vector<16x32xbf16>
    %cst_15 = arith.constant dense<0.000000e+00> : vector<16x64xf32>
    %39 = tpu.matmul %38, %34, %cst_15 {dimension_numbers = #tpu.dot_dimension_numbers<[1], [1], [0], [0], [0, 0, 1, 0], [], []>} : vector<16x32xbf16>, vector<64x32xbf16>, vector<16x64xf32> -> vector<16x64xf32>
    %40 = arith.addf %39, %10 : vector<16x64xf32>
    %cst_16 = arith.constant dense<0xFF800000> : vector<16xf32>
    %41 = vector.multi_reduction <maximumf>, %40, %cst_16 [1] : vector<16x64xf32> to vector<16xf32>
    %42 = vector.shape_cast %41 : vector<16xf32> to vector<16x1xf32>
    %43 = vector.broadcast %42 : vector<16x1xf32> to vector<16x64xf32>
    %44 = arith.subf %40, %43 : vector<16x64xf32>
    %45 = math.exp %44 : vector<16x64xf32>
    %46 = arith.truncf %45 : vector<16x64xf32> to vector<16x64xbf16>
    %cst_17 = arith.constant dense<0.000000e+00> : vector<16x32xf32>
    %47 = tpu.matmul %46, %37, %cst_17 {dimension_numbers = #tpu.dot_dimension_numbers<[1], [0], [0], [1], [0, 0, 1, 1], [], []>} : vector<16x64xbf16>, vector<64x32xbf16>, vector<16x32xf32> -> vector<16x32xf32>
    %48 = arith.truncf %9 : vector<64x32xf32> to vector<64x32xbf16>
    %cst_18 = arith.constant dense<0.000000e+00> : vector<16x32xf32>
    %49 = tpu.matmul %46, %48, %cst_18 {dimension_numbers = #tpu.dot_dimension_numbers<[1], [0], [0], [1], [0, 0, 1, 1], [], []>} : vector<16x64xbf16>, vector<64x32xbf16>, vector<16x32xf32> -> vector<16x32xf32>
    %50 = tpu.reciprocal %49 {approx = true} : vector<16x32xf32> -> vector<16x32xf32>
    %51 = arith.mulf %47, %50 : vector<16x32xf32>
    %52 = arith.truncf %51 : vector<16x32xf32> to vector<16x32xbf16>
    %cst_19 = arith.constant dense<0.000000e+00> : vector<16x32xf32>
    %53 = tpu.matmul %52, %8, %cst_19 {dimension_numbers = #tpu.dot_dimension_numbers<[1], [0], [0], [1], [0, 0, 1, 1], [], []>} : vector<16x32xbf16>, vector<32x32xbf16>, vector<16x32xf32> -> vector<16x32xf32>
    %54 = vector.broadcast %15 : vector<1x32xf32> to vector<16x32xf32>
    %55 = arith.addf %53, %54 : vector<16x32xf32>
    %56 = arith.addf %0, %55 : vector<16x32xf32>
    %cst_20 = arith.constant dense<0.000000e+00> : vector<16xf32>
    %57 = vector.multi_reduction <add>, %56, %cst_20 [1] : vector<16x32xf32> to vector<16xf32>
    %58 = vector.shape_cast %57 : vector<16xf32> to vector<16x1xf32>
    %cst_21 = arith.constant 3.200000e+01 : f32
    %59 = vector.broadcast %cst_21 : f32 to vector<16x1xf32>
    %60 = arith.divf %58, %59 : vector<16x1xf32>
    %61 = vector.broadcast %60 : vector<16x1xf32> to vector<16x32xf32>
    %62 = arith.subf %56, %61 : vector<16x32xf32>
    %63 = arith.mulf %62, %62 : vector<16x32xf32>
    %cst_22 = arith.constant dense<0.000000e+00> : vector<16xf32>
    %64 = vector.multi_reduction <add>, %63, %cst_22 [1] : vector<16x32xf32> to vector<16xf32>
    %65 = vector.shape_cast %64 : vector<16xf32> to vector<16x1xf32>
    %cst_23 = arith.constant 3.200000e+01 : f32
    %66 = vector.broadcast %cst_23 : f32 to vector<16x1xf32>
    %67 = arith.divf %65, %66 : vector<16x1xf32>
    %68 = vector.broadcast %60 : vector<16x1xf32> to vector<16x32xf32>
    %69 = arith.subf %56, %68 : vector<16x32xf32>
    %cst_24 = arith.constant 9.99999974E-6 : f32
    %70 = vector.broadcast %cst_24 : f32 to vector<16x1xf32>
    %71 = arith.addf %67, %70 : vector<16x1xf32>
    %72 = math.rsqrt %71 : vector<16x1xf32>
    %73 = vector.broadcast %72 : vector<16x1xf32> to vector<16x32xf32>
    %74 = arith.mulf %69, %73 : vector<16x32xf32>
    %75 = vector.broadcast %16 : vector<1x32xf32> to vector<16x32xf32>
    %76 = arith.mulf %74, %75 : vector<16x32xf32>
    %77 = vector.broadcast %17 : vector<1x32xf32> to vector<16x32xf32>
    %78 = arith.addf %76, %77 : vector<16x32xf32>
    %c0_25 = arith.constant 0 : index
    %c0_26 = arith.constant 0 : index
    %79 = vector.load %arg4[%c0_25, %c0_26] : memref<16x32xf32, #tpu.memory_space<vmem>>, vector<16x32xf32>
    tpu.vector_store %arg4[%c0_25, %c0_26], %78 {strides = array<i32>} : memref<16x32xf32, #tpu.memory_space<vmem>>, vector<16x32xf32>,
    return
  }
}

</mosaic_0001>

<bundles_post_ra>
// kernel: multi_head_attention.1
= control target key start
LH: loop header
LB: loop body
LE: loop exit
PB: predicated region body
PF: predicated region fallthrough
CT: control target
= control target key end

     0   :  { %s565_s0 = inlined_call_operand.vmem [shape: f32[16,32], index: 0, kind: input, shape index: {}]   ;;  %s566_s1 = inlined_call_operand.vmem [shape: f32[16,32], index: 1, kind: input, shape index: {}]   ;;  %s567_s2 = inlined_call_operand.vmem [shape: f32[16,32], index: 2, kind: input, shape index: {}]   ;;  %s568_s3 = inlined_call_operand.vmem [shape: f32[216,64], index: 3, kind: input, shape index: {}]   ;;  %s569_s4 = inlined_call_operand.hbm [shape: f32[16,32], index: 4, kind: output, shape index: {}]  }
   0x1   :  { %v29_v0 = vld [vmem:[%s568_s3 + $0x30] sm:$0xff]  ;;  %v30_v1 = vld [vmem:[%s568_s3 + $0x38] sm:$0xff]  ;;  %v27_v2 = vld [vmem:[%s568_s3 + $0x20] sm:$0xff] }
   0x2   :  { %v32_v3 = vpack.c.bf16 %v30_v1, %v29_v0  ;;  %v28_v4 = vld [vmem:[%s568_s3 + $0x28] sm:$0xff]  ;;  %v23_v5 = vld [vmem:[%s568_s3 + $0x10] sm:$0xff]  ;;  %v24_v6 = vld [vmem:[%s568_s3 + $0x18] sm:$0xff] }
   0x3   :  { %v21_v7 = vld [vmem:[%s568_s3] sm:$0xff]  ;;  %v31_v8 = vpack.c.bf16 %v28_v4, %v27_v2  ;;  %v77_v10 = vld [vmem:[%s566_s1 + $0x8] sm:$0xff]  ;;  %v26_v11 = vpack.c.bf16 %v24_v6, %v23_v5 }
   0x4   :  { %89 = vmatpush.bf16.msra.mxu1 %v32_v3  ;;  %v76_v9 = vld [vmem:[%s566_s1] sm:$0xff]  ;;  %v22_v12 = vld [vmem:[%s568_s3 + $0x8] sm:$0xff] }
   0x5   :  { %9 = vsyncpa [#allocation3], 0  ;;  %68 = vmatpush.bf16.msra.mxu0 %v26_v11  ;;  %v25_v13 = vpack.c.bf16 %v22_v12, %v21_v7  ;;  %v436_v14 = vld [vmem:[%s565_s0] sm:$0xff]  ;;  %v441_v15 = vld [vmem:[%s565_s0 + $0x8] sm:$0xff]  ;;  %v78_v16 = vpack.c.bf16 %v77_v10, %v76_v9  ;;  %vm58_vm0 = vcmask 261120   ;;  %vm172_vm1 = vcmask 523264  }
   0x6   :  { %v56_v17 = vpack.c.bf16 %v441_v15, %v436_v14  ;;  %v450_v18 = vld [vmem:[%s568_s3 + $0xd0] sm:$0xff]  ;;  %v461_v24 = vld [vmem:[%s568_s3 + $0xb8] sm:$0xff]  ;;  %v468_v28 = vld [vmem:[%s568_s3 + $0xa8] sm:$0xff]  ;;  %s311_s27 = sshll.u32 %s569_s4, 4  ;;  %s376_s28 = smov 128   ;;  %s312_s27 = int_to_ptr.hbm [resolvable:$true] %s311_s27 }
   0x7   :  { %v79_v20 = vperm.slane %v450_v18, 1  ;;  %v456_v23 = vld [vmem:[%s568_s3 + $0xb0] sm:$0xff]  ;;  %v473_v30 = vld [vmem:[%s568_s3 + $0xa0] sm:$0xff]  ;;  %v36_v34 = vld [vmem:[%s568_s3 + $0x58] sm:$0xff]  ;;  %v57_v57 = vperm.slane %v450_v18, 0  ;;  %v100_v0 = vperm.slane %v450_v18, 2 }
   0x8   :  { %90 = vmatpush.bf16.msra.mxu1 %v31_v8  ;;  %v35_v33 = vld [vmem:[%s568_s3 + $0x50] sm:$0xff]  ;;  %v33_v35 = vld [vmem:[%s568_s3 + $0x40] sm:$0xff]  ;;  %v34_v37 = vld [vmem:[%s568_s3 + $0x48] sm:$0xff]  ;;  %s377_s29 = smov 8  }
   0x9   :  { %69 = vmatpush.bf16.msra.mxu0 %v25_v13  ;;  %v38_v36 = vpack.c.bf16 %v36_v34, %v35_v33  ;;  %v37_v39 = vpack.c.bf16 %v34_v37, %v33_v35  ;;  %v97_v40 = vld [vmem:[%s567_s2] sm:$0xff]  ;;  %v98_v41 = vld [vmem:[%s567_s2 + $0x8] sm:$0xff]  ;;  %v499_v43 = vld [vmem:[%s568_s3 + $0x98] sm:$0xff] }
   0xa   :  { %v99_v44 = vpack.c.bf16 %v98_v41, %v97_v40  ;;  %v47_v45 = vld [vmem:[%s568_s3 + $0x90] sm:$0xff]  ;;  %v46_v51 = vld [vmem:[%s568_s3 + $0x88] sm:$0xff]  ;;  %v45_v52 = vld [vmem:[%s568_s3 + $0x80] sm:$0xff] }
   0xb   :  { %324 = vmatmul.msk.bf16.vlgmr.msra.gmra.mxu1 %vm58_vm0, %v78_v16  ;;  %110 = vmatpush.bf16.msra.mxu2 %v38_v36  ;;  %v53_v10 = vld [vmem:[%s568_s3 + $0xc0] sm:$0xff]  ;;  %v54_v16 = vld [vmem:[%s568_s3 + $0xc8] sm:$0xff]  ;;  %v204_v33 = vpack.c.bf16 %v499_v43, %v47_v45  ;;  %v203_v34 = vpack.c.bf16 %v46_v51, %v45_v52 }
   0xc   :  { %323 = vmatmul.msk.bf16.vlgmr.msra.gmra.mxu0 %vm58_vm0, %v56_v17 }
   0xf   :  { %111 = vmatpush.bf16.msra.mxu2 %v37_v39 }
  0x12   :  { %325 = vmatmul.msk.bf16.vlgmr.msra.gmra.mxu2 %vm58_vm0, %v99_v44  ;;  %v40_v44 = vld [vmem:[%s568_s3 + $0x68] sm:$0xff] }
  0x88   :  { %v92_v19 = vpop.f32.mrf.mxu1 }
  0x89   :  { %v93_v21 = vadd.f32 %v92_v19, %v79_v20  ;;  %v71_v50 = vpop.f32.mrf.mxu0 }
  0x8a   :  { %v72_v60 = vadd.f32 %v71_v50, %v57_v57 }
  0x8b   :  { %v124_v26 = vmul.f32 %v93_v21, %v456_v23  ;;  %v122_v38 = vmul.f32 %v93_v21, %v473_v30  ;;  %v120_v48 = vmul.f32 %v93_v21, %v47_v45  ;;  %v118_v55 = vmul.f32 %v93_v21, %v45_v52 }
  0x90   :  { %v94_v22 = vpop.f32.mrf.mxu1 }
  0x91   :  { %v95_v25 = vadd.f32 %v94_v22, %v79_v20  ;;  %v73_v58 = vpop.f32.mrf.mxu0 }
  0x92   :  { %v74_v61 = vadd.f32 %v73_v58, %v57_v57 }
  0x93   :  { %v125_v27 = vmul.f32 %v95_v25, %v461_v24  ;;  %v123_v32 = vmul.f32 %v95_v25, %v468_v28  ;;  %v121_v47 = vmul.f32 %v95_v25, %v499_v43  ;;  %v119_v54 = vmul.f32 %v95_v25, %v46_v51 }
  0x94   :  { %v142_v62 = vpack.c.bf16 %v74_v61, %v72_v60 }
  0x95   :  { %v129_v29 = vpack.c.bf16 %v125_v27, %v124_v26  ;;  %v128_v42 = vpack.c.bf16 %v123_v32, %v122_v38  ;;  %v127_v49 = vpack.c.bf16 %v121_v47, %v120_v48  ;;  %v126_v56 = vpack.c.bf16 %v119_v54, %v118_v55  ;;  %v113_v63 = vpop.f32.mrf.mxu2 }
  0x96   :  { %v114_v1 = vadd.f32 %v113_v63, %v100_v0  ;;  %v205_v32 = vpack.c.bf16 %v468_v28, %v473_v30  ;;  %v226_v55 = vperm.slane %v450_v18, 3 }
  0x97   :  { %v156_v31 = vsel %vm58_vm0, %v129_v29, 0  ;;  %v153_v46 = vsel %vm58_vm0, %v128_v42, 0  ;;  %v150_v53 = vsel %vm58_vm0, %v127_v49, 0  ;;  %v147_v59 = vsel %vm58_vm0, %v126_v56, 0 }
  0x98   :  { %162 = vmatpush.bf16.xpose.msra.mxu3 %v156_v31  ;;  %v136_v4 = vmul.f32 %v114_v1, %v456_v23  ;;  %v134_v6 = vmul.f32 %v114_v1, %v473_v30  ;;  %v132_v21 = vmul.f32 %v114_v1, %v47_v45  ;;  %v130_v26 = vmul.f32 %v114_v1, %v45_v52  ;;  %v42_v30 = vld [vmem:[%s568_s3 + $0x78] sm:$0xff] }
  0x99   :  { %v206_v31 = vpack.c.bf16 %v461_v24, %v456_v23 }
  0x9b   :  { %211 = vmatpush.bf16.msrb.mxu1 %v206_v31 }
  0x9d   :  { %v115_v2 = vpop.f32.mrf.mxu2 }
  0x9e   :  { %v116_v3 = vadd.f32 %v115_v2, %v100_v0  ;;  %v374_v0 = vmov 32.0  }
  0x9f   :  { %212 = vmatpush.bf16.msrb.mxu1 %v205_v32 }
  0xa0   :  { %163 = vmatpush.bf16.xpose.msra.mxu3 %v153_v46  ;;  %v137_v5 = vmul.f32 %v116_v3, %v461_v24  ;;  %v135_v7 = vmul.f32 %v116_v3, %v468_v28  ;;  %v133_v22 = vmul.f32 %v116_v3, %v499_v43  ;;  %v131_v27 = vmul.f32 %v116_v3, %v46_v51  ;;  %v41_v28 = vld [vmem:[%s568_s3 + $0x70] sm:$0xff]  ;;  %v39_v43 = vld [vmem:[%s568_s3 + $0x60] sm:$0xff]  ;;  %s375_s3 = smov [#allocation2]  }
  0xa1   :  { %v44_v42 = vpack.c.bf16 %v42_v30, %v41_v28  ;;  %v43_v45 = vpack.c.bf16 %v40_v44, %v39_v43  ;;  %s309_s24 = sshll.u32 %s375_s3, 4  ;;  %s310_s24 = int_to_ptr.vmem [resolvable:$true] %s309_s24 }
  0xa2   :  { %v141_v8 = vpack.c.bf16 %v137_v5, %v136_v4  ;;  %v140_v9 = vpack.c.bf16 %v135_v7, %v134_v6  ;;  %v139_v25 = vpack.c.bf16 %v133_v22, %v132_v21  ;;  %v138_v29 = vpack.c.bf16 %v131_v27, %v130_v26 }
  0xa3   :  { %213 = vmatpush.bf16.msrb.mxu1 %v204_v33  ;;  %236 = vmatpush.bf16.msrb.mxu2 %v44_v42 }
  0xa4   :  { %193 = vmatpush.bf16.msrb.mxu0 %v141_v8 }
  0xa7   :  { %214 = vmatpush.bf16.msrb.mxu1 %v203_v34  ;;  %237 = vmatpush.bf16.msrb.mxu2 %v43_v45 }
  0xa8   :  { %164 = vmatpush.bf16.xpose.msra.mxu3 %v150_v53  ;;  %194 = vmatpush.bf16.msrb.mxu0 %v140_v9 }
  0xac   :  { %195 = vmatpush.bf16.msrb.mxu0 %v139_v25 }
  0xb0   :  { %165 = vmatpush.bf16.xpose.msra.mxu3 %v147_v59  ;;  %196 = vmatpush.bf16.msrb.mxu0 %v138_v29 }
  0xb7   :  { %326 = vmatmul.msk.bf16.vlgmr.msra.gmra.mxu3 %vm58_vm0, %v142_v62 }
 0x13a   :  { %v167_v11 = vpop.f32.mrf.mxu3 }
 0x13b   :  { %v168_v12 = vadd.f32 %v167_v11, %v53_v10 }
 0x13d   :  { %v173_v13 = vsel %vm172_vm1, %v168_v12, -inf }
 0x13e   :  { %174 = vmax.xlane.f32.xlu0 %v173_v13 }
 0x142   :  { %v169_v17 = vpop.f32.mrf.mxu3 }
 0x143   :  { %v170_v19 = vadd.f32 %v169_v17, %v54_v16 }
 0x145   :  { %v176_v20 = vsel %vm172_vm1, %v170_v19, -inf }
 0x146   :  { %177 = vmax.xlane.f32.xlu0 %v176_v20 }
 0x1b1   :  { %v175_v35 = vpop.xlane.xlu0 %174 }
 0x1b2   :  { %v179_v36 = vsub.f32 %v168_v12, %v175_v35 }
 0x1b4   :  { %v181_v37 = vmul.f32 1.442695, %v179_v36  ;;  %v297_v36 = vperm.slane %v450_v18, 4 }
 0x1b6   :  { %334 = vpow2.f32 %v181_v37 }
 0x1b9   :  { %v178_v38 = vpop.xlane.xlu0 %177 }
 0x1ba   :  { %v180_v39 = vsub.f32 %v170_v19, %v178_v38 }
 0x1bc   :  { %v183_v40 = vmul.f32 1.442695, %v180_v39  ;;  %v335_v23 = vpop.eup %334 }
 0x1be   :  { %336 = vpow2.f32 %v183_v40  ;;  %v300_v40 = vperm.slane %v450_v18, 5 }
 0x1c4   :  { %v337_v24 = vpop.eup %336 }
 0x1c5   :  { %v185_v41 = vpack.c.bf16 %v337_v24, %v335_v23 }
 0x1c7   :  { %327 = vmatmul.msk.bf16.vlgmr.msrb.gmra.mxu0 %vm172_vm1, %v185_v41  ;;  %328 = vmatmul.msk.bf16.vlgmr.msrb.gmra.mxu1 %vm172_vm1, %v185_v41 }
 0x244   :  { %v216_v46 = vpop.f32.mrf.mxu1  ;;  %v198_v47 = vpop.f32.mrf.mxu0 }
 0x245   :  { %338 = vrcp.f32 %v216_v46 }
 0x24b   :  { %v339_v49 = vpop.eup %338 }
 0x24c   :  { %v218_v48 = vpop.f32.mrf.mxu1  ;;  %v200_v51 = vpop.f32.mrf.mxu0  ;;  %v223_v52 = vmul.f32 %v339_v49, %v198_v47 }
 0x24d   :  { %340 = vrcp.f32 %v218_v48 }
 0x24e   :  { %342 = vrcp.f32 %v374_v0 }
 0x253   :  { %v341_v50 = vpop.eup %340 }
 0x254   :  { %v224_v53 = vmul.f32 %v341_v50, %v200_v51  ;;  %v343_v1 = vpop.eup %342 }
 0x255   :  { %v253_v2 = vmul.f32 32.0, %v343_v1  ;;  %vm257_vm2 = vweird.f32 %v343_v1 }
 0x256   :  { %v225_v54 = vpack.c.bf16 %v224_v53, %v223_v52 }
 0x257   :  { %v254_v3 = vsub.f32 1.0, %v253_v2 }
 0x258   :  { %329 = vmatmul.msk.bf16.vlgmr.msrb.gmra.mxu2 %vm58_vm0, %v225_v54 }
 0x259   :  { %v255_v4 = vmul.f32 %v343_v1, %v254_v3 }
 0x25b   :  { %v256_v5 = vadd.f32 %v343_v1, %v255_v4 }
 0x25d   :  { %v258_v6 = vsel %vm257_vm2, %v343_v1, %v256_v5 }
 0x2db   :  { %v239_v56 = vpop.f32.mrf.mxu2 }
 0x2dc   :  { %v240_v57 = vadd.f32 %v239_v56, %v226_v55 }
 0x2de   :  { %v244_v58 = vadd.f32 %v240_v57, %v436_v14 }
 0x2e0   :  { %v246_v59 = vsel %vm58_vm0, %v244_v58, 0.0 }
 0x2e1   :  { %247 = vadd.xlane.f32.xlu1 %v246_v59 }
 0x2e3   :  { %v241_v60 = vpop.f32.mrf.mxu2 }
 0x2e4   :  { %v242_v61 = vadd.f32 %v241_v60, %v226_v55 }
 0x2e6   :  { %v245_v62 = vadd.f32 %v242_v61, %v441_v15 }
 0x2e8   :  { %v249_v63 = vsel %vm58_vm0, %v245_v62, 0.0 }
 0x2e9   :  { %250 = vadd.xlane.f32.xlu1 %v249_v63 }
 0x354   :  { %v248_v14 = vpop.xlane.xlu1 %247 }
 0x355   :  { %v259_v7 = vmul.f32 %v258_v6, %v248_v14 }
 0x357   :  { %v261_v8 = vsub.f32 %v244_v58, %v259_v7 }
 0x359   :  { %v263_v9 = vmul.f32 %v261_v8, %v261_v8 }
 0x35b   :  { %v265_v10 = vsel %vm58_vm0, %v263_v9, 0.0 }
 0x35c   :  { %266 = vadd.xlane.f32.xlu2 %v265_v10  ;;  %v251_v15 = vpop.xlane.xlu1 %250 }
 0x35d   :  { %v260_v11 = vmul.f32 %v258_v6, %v251_v15 }
 0x35f   :  { %v262_v12 = vsub.f32 %v245_v62, %v260_v11 }
 0x361   :  { %v264_v13 = vmul.f32 %v262_v12, %v262_v12 }
 0x363   :  { %v268_v16 = vsel %vm58_vm0, %v264_v13, 0.0 }
 0x364   :  { %269 = vadd.xlane.f32.xlu2 %v268_v16 }
 0x3cf   :  { %v267_v17 = vpop.xlane.xlu2 %266 }
 0x3d0   :  { %v271_v19 = vmul.f32 %v267_v17, %v258_v6 }
 0x3d2   :  { %v273_v20 = vadd.f32 1e-05, %v271_v19 }
 0x3d4   :  { %344 = vrsqrt.f32 %v273_v20  ;;  %vm281_vm4 = vweird.f32 %v273_v20 }
 0x3d7   :  { %v270_v21 = vpop.xlane.xlu2 %269 }
 0x3d8   :  { %v272_v22 = vmul.f32 %v270_v21, %v258_v6 }
 0x3da   :  { %v345_v25 = vpop.eup %344  ;;  %v274_v26 = vadd.f32 1e-05, %v272_v22 }
 0x3db   :  { %v276_v27 = vmul.f32 %v345_v25, %v273_v20  ;;  %vm282_vm3 = vweird.f32 %v345_v25 }
 0x3dc   :  { %346 = vrsqrt.f32 %v274_v26  ;;  %vm283_vm5 = vmor %vm281_vm4, %vm282_vm3  ;;  %vm291_vm7 = vweird.f32 %v274_v26 }
 0x3dd   :  { %v277_v29 = vmul.f32 %v345_v25, %v276_v27 }
 0x3df   :  { %v278_v31 = vmul.f32 0.5, %v277_v29 }
 0x3e1   :  { %v279_v32 = vsub.f32 1.5, %v278_v31 }
 0x3e2   :  { %v347_v33 = vpop.eup %346 }
 0x3e3   :  { %v280_v34 = vmul.f32 %v345_v25, %v279_v32  ;;  %v286_v35 = vmul.f32 %v347_v33, %v274_v26  ;;  %vm292_vm6 = vweird.f32 %v347_v33 }
 0x3e4   :  { %vm293_vm8 = vmor %vm291_vm7, %vm292_vm6 }
 0x3e5   :  { %v284_v37 = vsel %vm283_vm5, %v345_v25, %v280_v34  ;;  %v287_v38 = vmul.f32 %v347_v33, %v286_v35 }
 0x3e6   :  { %v295_v39 = vmul.f32 %v284_v37, %v261_v8 }
 0x3e7   :  { %v288_v23 = vmul.f32 0.5, %v287_v38 }
 0x3e8   :  { %v298_v24 = vmul.f32 %v297_v36, %v295_v39 }
 0x3e9   :  { %v289_v41 = vsub.f32 1.5, %v288_v23 }
 0x3ea   :  { %v301_v28 = vadd.f32 %v300_v40, %v298_v24 }
 0x3eb   :  { %v290_v30 = vmul.f32 %v347_v33, %v289_v41 }
 0x3ec   :  { %303 = vst.msk [vmem:[#allocation2] sm:$0xff] %vm58_vm0, %v301_v28 }
 0x3ed   :  { %v294_v42 = vsel %vm293_vm8, %v347_v33, %v290_v30 }
 0x3ee   :  { %v296_v43 = vmul.f32 %v294_v42, %v262_v12 }
 0x3f0   :  { %v299_v44 = vmul.f32 %v297_v36, %v296_v43 }
 0x3f2   :  { %v302_v18 = vadd.f32 %v300_v40, %v299_v44 }
 0x3f4   :  { %304 = vst.msk [vmem:[#allocation2 + $0x8] sm:$0xff] %vm58_vm0, %v302_v18 }
 0x3f5   :  { %317 = dma.vmem_to_hbm [thread:$0]  %s310_s24, 256, %s312_s27, [#allocation3], %s376_s28, %s376_s28, %s377_s29  }
 0x3f6   :  { %372 = dma.done.wait [#allocation3], 256  }
 0x3f7   :  { %373 = vsyncadd [#allocation3], 4294967040 }
 0x3f8   :  { %322 = vsyncpa [#allocation3], 1 }

</bundles_post_ra>
